<compile_context>
chip_gen: v5e
topology: v5e:2x2
jax: 0.10.0
libtpu: 0.0.40
codegen_flags: <defaults>
</compile_context>

<pallas_src>
import jax
import jax.numpy as jnp
from jax.experimental import pallas as pl
from jax.experimental.pallas import tpu as pltpu


def aefc_kernel(x_ref, w1_ref, b1_ref, w2_ref, b2_ref,
                w3_ref, b3_ref, w4_ref, b4_ref, o_ref):
    """Whole 4-layer MLP hot path fused: MXU matmuls with f32 accumulation,
    ReLU on the VPU, tanh on the EUP. Intermediates are cast back to the
    storage dtype so bf16 inputs keep every matmul bf16 x bf16 on the MXU."""
    f32 = jnp.float32
    act = x_ref.dtype
    h = jnp.dot(x_ref[...], w1_ref[...], preferred_element_type=f32) + b1_ref[...]
    h = jnp.maximum(h, 0.0).astype(act)                         # ReLU
    h = jnp.dot(h, w2_ref[...], preferred_element_type=f32) + b2_ref[...]
    h = jnp.maximum(h, 0.0).astype(act)                         # ReLU
    h = jnp.dot(h, w3_ref[...], preferred_element_type=f32) + b3_ref[...]
    h = jnp.maximum(h, 0.0).astype(act)                         # ReLU
    h = jnp.dot(h, w4_ref[...], preferred_element_type=f32) + b4_ref[...]
    o_ref[...] = jnp.tanh(h).astype(o_ref.dtype)                # Tanh


_FLOOR_ROWS = 256  # below this, per-grid-step overhead (~0.35 us) starts to dominate


def _min_sublane(itemsize):
    # f32 -> 8, bf16 -> 16, int8/fp8 -> 32 (sub-32-bit dtypes pack on sublanes).
    return max(8, 32 // int(itemsize))


def _vmem_capacity_bytes():
    try:
        return int(pltpu.get_tpu_info().vmem_capacity_bytes)
    except Exception:
        return 64 << 20  # conservative fallback: v7x per-TensorCore VMEM


def _pick_block_b(B, Dp, d8, d16, itemsize, vmem_cap):
    """Largest batch tile that (a) is sublane-aligned (or the whole batch),
    (b) divides B exactly, (c) fits ~0.4x of per-core VMEM for the
    double-buffered x/out streams + f32 intermediates, and (d) still leaves
    >= 2 grid steps when the batch is large (DMA pipelining + both v7x TCs)."""
    sub = _min_sublane(itemsize)
    if B % sub != 0 or B < 2 * _FLOOR_ROWS:
        return B  # small or oddly-sized batch: one full-extent tile is best
    # Per-row VMEM cost: double-buffered x+out streams + f32 intermediates.
    per_row = 2 * 2 * Dp * itemsize + (Dp + 2 * d8 + d16) * 4
    budget = int(0.40 * vmem_cap)
    cap = max(sub, (budget // per_row) // sub * sub)
    # Keep >= 2 steps so DMAs overlap compute and both v7x TensorCores get work.
    split = max(_FLOOR_ROWS, (B // 2) // sub * sub)
    floor = _FLOOR_ROWS if cap >= _FLOOR_ROWS else sub
    bb = min(B, cap, split)
    bb = max(floor, (bb // sub) * sub)
    while bb > floor and B % bb:
        bb -= sub
    if B % bb:
        return B  # awkward divisors: prefer one big tile over tiny steps
    return bb


def _vmem_limit(block_b, Dp, d8, d16, itemsize, const_bytes, vmem_cap):
    stream = 2 * 2 * block_b * Dp * itemsize          # x + out, double-buffered
    inter = block_b * (Dp + 2 * d8 + d16) * 4         # f32 in-kernel intermediates
    need = stream + 2 * const_bytes + inter + (2 << 20)
    return int(min(max(need, 16 << 20), int(0.6 * vmem_cap)))


def aefc_forward(x, params, *, block_b=None, vmem_limit_bytes=None):
    """x: [B, D] float32 or bfloat16. params: w1..w4 ([in,out]), b1..b4 ([1,out])."""
    B, D = x.shape
    w1, b1 = params["w1"], params["b1"]
    w2, b2 = params["w2"], params["b2"]
    w3, b3 = params["w3"], params["b3"]
    w4, b4 = params["w4"], params["b4"]
    assert w1.shape[0] == D and w4.shape[1] == D, \
        "weight shapes inconsistent with data_size"
    d8, d16 = w1.shape[1], w2.shape[1]

    # Lane-dense output store: pad the feature axis to a multiple of 128 so the
    # one stream that actually hits HBM (x/out) uses unmasked vector stores.
    Dp = ((D + 127) // 128) * 128
    if Dp != D:
        pad = Dp - D
        x = jnp.pad(x, ((0, 0), (0, pad)))
        w1 = jnp.pad(w1, ((0, pad), (0, 0)))
        w4 = jnp.pad(w4, ((0, 0), (0, pad)))
        b4 = jnp.pad(b4, ((0, 0), (0, pad)))

    consts = (w1, b1, w2, b2, w3, b3, w4, b4)
    const_bytes = sum(int(a.size) * a.dtype.itemsize for a in consts)
    itemsize = x.dtype.itemsize
    vmem_cap = _vmem_capacity_bytes()

    if block_b is None:
        block_b = _pick_block_b(B, Dp, d8, d16, itemsize, vmem_cap)
    sub = _min_sublane(itemsize)
    # (8,128) BlockSpec rule: the batch tile must be sublane-aligned unless it
    # spans the whole batch; the feature axis is always a full-extent block.
    assert block_b == B or block_b % sub == 0, \
        f"block_b must be a multiple of {sub} (sublane packing for {x.dtype}) or equal to B"
    assert B % block_b == 0, "block_b must divide the batch size B"
    grid = (B // block_b,)

    if vmem_limit_bytes is None:
        vmem_limit_bytes = _vmem_limit(block_b, Dp, d8, d16, itemsize,
                                       const_bytes, vmem_cap)

    io_spec = pl.BlockSpec((block_b, Dp), lambda i: (i, 0))

    def const_spec(a):
        # Same block index every grid step -> loaded once, stays resident.
        return pl.BlockSpec(a.shape, lambda i: (0, 0))

    # TODO(synk): for data_size >= ~4096, tile w1 over its input-feature axis and
    # w4 over its output-feature axis (extra "arbitrary" grid axes + f32 VMEM
    # accumulators) instead of fully-resident weight blocks, so the fused kernel
    # keeps fitting v7x (64 MiB/TC) and v5e scoped VMEM at large D.

    out = pl.pallas_call(
        aefc_kernel,
        out_shape=jax.ShapeDtypeStruct((B, Dp), x.dtype),
        grid_spec=pltpu.PrefetchScalarGridSpec(
            num_scalar_prefetch=0,
            grid=grid,
            in_specs=[io_spec] + [const_spec(a) for a in consts],
            out_specs=io_spec,
        ),
        compiler_params=pltpu.CompilerParams(
            dimension_semantics=("parallel",),
            vmem_limit_bytes=int(vmem_limit_bytes),
        ),
    )(x, *consts)

    if Dp != D:
        out = out[:, :D]
    return out


def init_params(key, data_size):
    """Deterministic init mimicking PyTorch nn.Linear default (uniform +-1/sqrt(fan_in))."""
    d8 = data_size // 8
    d16 = data_size // 16
    dims = [(data_size, d8), (d8, d16), (d16, d8), (d8, data_size)]
    params = {}
    keys = jax.random.split(key, 2 * len(dims))
    for n, (fan_in, fan_out) in enumerate(dims):
        bound = 1.0 / (fan_in ** 0.5)
        params[f"w{n+1}"] = jax.random.uniform(
            keys[2 * n], (fan_in, fan_out), jnp.float32, -bound, bound)
        params[f"b{n+1}"] = jax.random.uniform(
            keys[2 * n + 1], (1, fan_out), jnp.float32, -bound, bound)
    return params


def aefc_reference(x, params):
    """Plain-JAX reference matching the kernel math (f32 accumulation, storage-dtype
    intermediates; for f32 inputs the casts are no-ops)."""
    f32 = jnp.float32
    act = x.dtype
    h = jnp.dot(x, params["w1"], preferred_element_type=f32) + params["b1"]
    h = jnp.maximum(h, 0.0).astype(act)
    h = jnp.dot(h, params["w2"], preferred_element_type=f32) + params["b2"]
    h = jnp.maximum(h, 0.0).astype(act)
    h = jnp.dot(h, params["w3"], preferred_element_type=f32) + params["b3"]
    h = jnp.maximum(h, 0.0).astype(act)
    h = jnp.dot(h, params["w4"], preferred_element_type=f32) + params["b4"]
    return jnp.tanh(h).astype(x.dtype)


if __name__ == "__main__":
    data_size = 128            # hidden widths: D/8 = 16, D/16 = 8
    key = jax.random.PRNGKey(0)
    kx, kp = jax.random.split(key)
    params = init_params(kp, data_size)

    # 1) Small f32 case (single full-batch tile, one grid step).
    x_small = jax.random.normal(kx, (8, data_size), dtype=jnp.float32)
    out_small = jax.block_until_ready(aefc_forward(x_small, params))
    ref_small = aefc_reference(x_small, params)
    assert out_small.shape == x_small.shape and out_small.dtype == x_small.dtype
    assert jnp.allclose(out_small, ref_small, atol=1e-5, rtol=1e-5)

    # 2) Larger f32 case: large tiles (1024 rows) with a 2-step "parallel" grid
    #    (DMA double-buffering + both v7x TensorCores busy).
    x_big = jax.random.normal(kx, (2048, data_size), dtype=jnp.float32)
    out_big = jax.block_until_ready(aefc_forward(x_big, params))
    ref_big = aefc_reference(x_big, params)
    assert jnp.allclose(out_big, ref_big, atol=1e-5, rtol=1e-5)

    # 3) bf16 activations/weights: bf16 x bf16 MXU matmuls end-to-end with f32
    #    accumulation; halves HBM traffic for the x/out streams.
    x_bf = x_big.astype(jnp.bfloat16)
    params_bf = {k: (v.astype(jnp.bfloat16) if k.startswith("w") else v)
                 for k, v in params.items()}
    out_bf = jax.block_until_ready(aefc_forward(x_bf, params_bf))
    ref_bf = aefc_reference(x_bf, params_bf)
    assert out_bf.dtype == jnp.bfloat16
    assert jnp.allclose(out_bf.astype(jnp.float32), ref_bf.astype(jnp.float32),
                        atol=2e-2)

    print("KERNEL_OK")
</pallas_src>

<mosaic_0001>
module attributes {stable_mosaic.version = 11 : i64} {
  func.func @aefc_kernel(%arg0: i32, %arg1: memref<8x128xf32, #tpu.memory_space<vmem>>, %arg2: memref<128x16xf32, #tpu.memory_space<vmem>>, %arg3: memref<1x16xf32, #tpu.memory_space<vmem>>, %arg4: memref<16x8xf32, #tpu.memory_space<vmem>>, %arg5: memref<1x8xf32, #tpu.memory_space<vmem>>, %arg6: memref<8x16xf32, #tpu.memory_space<vmem>>, %arg7: memref<1x16xf32, #tpu.memory_space<vmem>>, %arg8: memref<16x128xf32, #tpu.memory_space<vmem>>, %arg9: memref<1x128xf32, #tpu.memory_space<vmem>>, %arg10: memref<8x128xf32, #tpu.memory_space<vmem>>) attributes {dimension_semantics = [#tpu.dimension_semantics<parallel>], iteration_bounds = array<i64: 1>, scalar_prefetch = 0 : i64, scratch_operands = 0 : i64, tpu.core_type = #tpu.core_type<tc>, window_params = [{transform_indices = @transform_0, window_bounds = array<i64: 8, 128>}, {pipeline_mode = #tpu.pipeline_mode<synchronous>, transform_indices = @transform_1, window_bounds = array<i64: 128, 16>}, {pipeline_mode = #tpu.pipeline_mode<synchronous>, transform_indices = @transform_2, window_bounds = array<i64: 1, 16>}, {pipeline_mode = #tpu.pipeline_mode<synchronous>, transform_indices = @transform_3, window_bounds = array<i64: 16, 8>}, {pipeline_mode = #tpu.pipeline_mode<synchronous>, transform_indices = @transform_4, window_bounds = array<i64: 1, 8>}, {pipeline_mode = #tpu.pipeline_mode<synchronous>, transform_indices = @transform_5, window_bounds = array<i64: 8, 16>}, {pipeline_mode = #tpu.pipeline_mode<synchronous>, transform_indices = @transform_6, window_bounds = array<i64: 1, 16>}, {pipeline_mode = #tpu.pipeline_mode<synchronous>, transform_indices = @transform_7, window_bounds = array<i64: 16, 128>}, {pipeline_mode = #tpu.pipeline_mode<synchronous>, transform_indices = @transform_8, window_bounds = array<i64: 1, 128>}, {transform_indices = @transform_9, window_bounds = array<i64: 8, 128>}]} {
    %c0 = arith.constant 0 : index
    %c0_0 = arith.constant 0 : index
    %0 = vector.load %arg1[%c0, %c0_0] : memref<8x128xf32, #tpu.memory_space<vmem>>, vector<8x128xf32>
    %c0_1 = arith.constant 0 : index
    %c0_2 = arith.constant 0 : index
    %1 = vector.load %arg2[%c0_1, %c0_2] : memref<128x16xf32, #tpu.memory_space<vmem>>, vector<128x16xf32>
    %cst = arith.constant dense<0.000000e+00> : vector<8x16xf32>
    %2 = tpu.matmul %0, %1, %cst {dimension_numbers = #tpu.dot_dimension_numbers<[1], [0], [0], [1], [0, 0, 1, 1], [], []>} : vector<8x128xf32>, vector<128x16xf32>, vector<8x16xf32> -> vector<8x16xf32>
    %c0_3 = arith.constant 0 : index
    %c0_4 = arith.constant 0 : index
    %3 = vector.load %arg3[%c0_3, %c0_4] : memref<1x16xf32, #tpu.memory_space<vmem>>, vector<1x16xf32>
    %4 = vector.broadcast %3 : vector<1x16xf32> to vector<8x16xf32>
    %5 = arith.addf %2, %4 : vector<8x16xf32>
    %cst_5 = arith.constant 0.000000e+00 : f32
    %6 = vector.broadcast %cst_5 : f32 to vector<8x16xf32>
    %7 = arith.maximumf %5, %6 : vector<8x16xf32>
    %c0_6 = arith.constant 0 : index
    %c0_7 = arith.constant 0 : index
    %8 = vector.load %arg4[%c0_6, %c0_7] : memref<16x8xf32, #tpu.memory_space<vmem>>, vector<16x8xf32>
    %cst_8 = arith.constant dense<0.000000e+00> : vector<8x8xf32>
    %9 = tpu.matmul %7, %8, %cst_8 {dimension_numbers = #tpu.dot_dimension_numbers<[1], [0], [0], [1], [0, 0, 1, 1], [], []>} : vector<8x16xf32>, vector<16x8xf32>, vector<8x8xf32> -> vector<8x8xf32>
    %c0_9 = arith.constant 0 : index
    %c0_10 = arith.constant 0 : index
    %10 = vector.load %arg5[%c0_9, %c0_10] : memref<1x8xf32, #tpu.memory_space<vmem>>, vector<1x8xf32>
    %11 = vector.broadcast %10 : vector<1x8xf32> to vector<8x8xf32>
    %12 = arith.addf %9, %11 : vector<8x8xf32>
    %cst_11 = arith.constant 0.000000e+00 : f32
    %13 = vector.broadcast %cst_11 : f32 to vector<8x8xf32>
    %14 = arith.maximumf %12, %13 : vector<8x8xf32>
    %c0_12 = arith.constant 0 : index
    %c0_13 = arith.constant 0 : index
    %15 = vector.load %arg6[%c0_12, %c0_13] : memref<8x16xf32, #tpu.memory_space<vmem>>, vector<8x16xf32>
    %cst_14 = arith.constant dense<0.000000e+00> : vector<8x16xf32>
    %16 = tpu.matmul %14, %15, %cst_14 {dimension_numbers = #tpu.dot_dimension_numbers<[1], [0], [0], [1], [0, 0, 1, 1], [], []>} : vector<8x8xf32>, vector<8x16xf32>, vector<8x16xf32> -> vector<8x16xf32>
    %c0_15 = arith.constant 0 : index
    %c0_16 = arith.constant 0 : index
    %17 = vector.load %arg7[%c0_15, %c0_16] : memref<1x16xf32, #tpu.memory_space<vmem>>, vector<1x16xf32>
    %18 = vector.broadcast %17 : vector<1x16xf32> to vector<8x16xf32>
    %19 = arith.addf %16, %18 : vector<8x16xf32>
    %cst_17 = arith.constant 0.000000e+00 : f32
    %20 = vector.broadcast %cst_17 : f32 to vector<8x16xf32>
    %21 = arith.maximumf %19, %20 : vector<8x16xf32>
    %c0_18 = arith.constant 0 : index
    %c0_19 = arith.constant 0 : index
    %22 = vector.load %arg8[%c0_18, %c0_19] : memref<16x128xf32, #tpu.memory_space<vmem>>, vector<16x128xf32>
    %cst_20 = arith.constant dense<0.000000e+00> : vector<8x128xf32>
    %23 = tpu.matmul %21, %22, %cst_20 {dimension_numbers = #tpu.dot_dimension_numbers<[1], [0], [0], [1], [0, 0, 1, 1], [], []>} : vector<8x16xf32>, vector<16x128xf32>, vector<8x128xf32> -> vector<8x128xf32>
    %c0_21 = arith.constant 0 : index
    %c0_22 = arith.constant 0 : index
    %24 = vector.load %arg9[%c0_21, %c0_22] : memref<1x128xf32, #tpu.memory_space<vmem>>, vector<1x128xf32>
    %25 = vector.broadcast %24 : vector<1x128xf32> to vector<8x128xf32>
    %26 = arith.addf %23, %25 : vector<8x128xf32>
    %27 = math.tanh %26 : vector<8x128xf32>
    %c0_23 = arith.constant 0 : index
    %c0_24 = arith.constant 0 : index
    %28 = vector.load %arg10[%c0_23, %c0_24] : memref<8x128xf32, #tpu.memory_space<vmem>>, vector<8x128xf32>
    tpu.vector_store %arg10[%c0_23, %c0_24], %27 {strides = array<i32>} : memref<8x128xf32, #tpu.memory_space<vmem>>, vector<8x128xf32>,
    return
  }
  func.func @transform_0(%arg0: i32) -> (i32, i32) {
    %c0_i32 = arith.constant 0 : i32
    %c0_i32_0 = arith.constant 0 : i32
    return %arg0, %c0_i32 : i32, i32
  }
  func.func @transform_1(%arg0: i32) -> (i32, i32) {
    %c0_i32 = arith.constant 0 : i32
    %c0_i32_0 = arith.constant 0 : i32
    %c0_i32_1 = arith.constant 0 : i32
    return %c0_i32, %c0_i32_0 : i32, i32
  }
  func.func @transform_2(%arg0: i32) -> (i32, i32) {
    %c0_i32 = arith.constant 0 : i32
    %c0_i32_0 = arith.constant 0 : i32
    %c0_i32_1 = arith.constant 0 : i32
    return %c0_i32, %c0_i32_0 : i32, i32
  }
  func.func @transform_3(%arg0: i32) -> (i32, i32) {
    %c0_i32 = arith.constant 0 : i32
    %c0_i32_0 = arith.constant 0 : i32
    %c0_i32_1 = arith.constant 0 : i32
    return %c0_i32, %c0_i32_0 : i32, i32
  }
  func.func @transform_4(%arg0: i32) -> (i32, i32) {
    %c0_i32 = arith.constant 0 : i32
    %c0_i32_0 = arith.constant 0 : i32
    %c0_i32_1 = arith.constant 0 : i32
    return %c0_i32, %c0_i32_0 : i32, i32
  }
  func.func @transform_5(%arg0: i32) -> (i32, i32) {
    %c0_i32 = arith.constant 0 : i32
    %c0_i32_0 = arith.constant 0 : i32
    %c0_i32_1 = arith.constant 0 : i32
    return %c0_i32, %c0_i32_0 : i32, i32
  }
  func.func @transform_6(%arg0: i32) -> (i32, i32) {
    %c0_i32 = arith.constant 0 : i32
    %c0_i32_0 = arith.constant 0 : i32
    %c0_i32_1 = arith.constant 0 : i32
    return %c0_i32, %c0_i32_0 : i32, i32
  }
  func.func @transform_7(%arg0: i32) -> (i32, i32) {
    %c0_i32 = arith.constant 0 : i32
    %c0_i32_0 = arith.constant 0 : i32
    %c0_i32_1 = arith.constant 0 : i32
    return %c0_i32, %c0_i32_0 : i32, i32
  }
  func.func @transform_8(%arg0: i32) -> (i32, i32) {
    %c0_i32 = arith.constant 0 : i32
    %c0_i32_0 = arith.constant 0 : i32
    %c0_i32_1 = arith.constant 0 : i32
    return %c0_i32, %c0_i32_0 : i32, i32
  }
  func.func @transform_9(%arg0: i32) -> (i32, i32) {
    %c0_i32 = arith.constant 0 : i32
    %c0_i32_0 = arith.constant 0 : i32
    return %arg0, %c0_i32 : i32, i32
  }
}

</mosaic_0001>

<bundles_post_ra>
// kernel: tpu_custom_call.1
= control target key start
LH: loop header
LB: loop body
LE: loop exit
PB: predicated region body
PF: predicated region fallthrough
CT: control target
= control target key end

     0   :  { %s353_s0 = inlined_call_operand.vmem [shape: f32[8,128], index: 0, kind: input, shape index: {}]   ;;  %s354_s1 = inlined_call_operand.vmem [shape: f32[128,16], index: 1, kind: input, shape index: {}]   ;;  %s355_s2 = inlined_call_operand.vmem [shape: f32[1,16], index: 2, kind: input, shape index: {}]   ;;  %s356_s3 = inlined_call_operand.vmem [shape: f32[16,8], index: 3, kind: input, shape index: {}]   ;;  %s357_s4 = inlined_call_operand.vmem [shape: f32[1,8], index: 4, kind: input, shape index: {}]   ;;  %s358_s5 = inlined_call_operand.vmem [shape: f32[8,16], index: 5, kind: input, shape index: {}]   ;;  %s359_s6 = inlined_call_operand.vmem [shape: f32[1,16], index: 6, kind: input, shape index: {}]   ;;  %s360_s7 = inlined_call_operand.vmem [shape: f32[16,128], index: 7, kind: input, shape index: {}]   ;;  %s361_s8 = inlined_call_operand.vmem [shape: f32[1,128], index: 8, kind: input, shape index: {}]   ;;  %s362_s9 = inlined_call_operand.hbm [shape: f32[8,128], index: 9, kind: output, shape index: {}]  }
   0x1   :  { %v49_v0 = vld [vmem:[%s354_s1 + $0x78] sm:$0xff]  ;;  %v48_v1 = vld [vmem:[%s354_s1 + $0x70] sm:$0xff]  ;;  %v47_v2 = vld [vmem:[%s354_s1 + $0x68] sm:$0xff] }
   0x2   :  { %54 = vmatpush.msra.mxu0 %v49_v0  ;;  %v46_v3 = vld [vmem:[%s354_s1 + $0x60] sm:$0xff]  ;;  %v45_v4 = vld [vmem:[%s354_s1 + $0x58] sm:$0xff] }
   0x4   :  { %55 = vmatpush.msra.mxu0 %v48_v1 }
   0x6   :  { %56 = vmatpush.msra.mxu0 %v47_v2 }
   0x8   :  { %57 = vmatpush.msra.mxu0 %v46_v3 }
   0x9   :  { %14 = vsyncpa [#allocation3], 0  ;;  %v44_v5 = vld [vmem:[%s354_s1 + $0x50] sm:$0xff]  ;;  %v43_v6 = vld [vmem:[%s354_s1 + $0x48] sm:$0xff]  ;;  %vm81_vm0 = vcmask 130048   ;;  %vm111_vm1 = vcmask 64512  }
   0xa   :  { %58 = vmatpush.msra.mxu0 %v45_v4  ;;  %v42_v7 = vld [vmem:[%s354_s1 + $0x40] sm:$0xff]  ;;  %v41_v8 = vld [vmem:[%s354_s1 + $0x38] sm:$0xff]  ;;  %v40_v9 = vld [vmem:[%s354_s1 + $0x30] sm:$0xff]  ;;  %s219_s13 = smov [#allocation2]   ;;  %s174_s16 = sshll.u32 %s362_s9, 4  ;;  %s175_s16 = int_to_ptr.hbm [resolvable:$true] %s174_s16 }
   0xb   :  { %v39_v10 = vld [vmem:[%s354_s1 + $0x28] sm:$0xff]  ;;  %v38_v11 = vld [vmem:[%s354_s1 + $0x20] sm:$0xff]  ;;  %v37_v12 = vld [vmem:[%s354_s1 + $0x18] sm:$0xff]  ;;  %s172_s14 = sshll.u32 %s219_s13, 4  ;;  %s173_s14 = int_to_ptr.vmem [resolvable:$true] %s172_s14 }
   0xc   :  { %59 = vmatpush.msra.mxu0 %v44_v5  ;;  %v36_v13 = vld [vmem:[%s354_s1 + $0x10] sm:$0xff]  ;;  %v35_v14 = vld [vmem:[%s354_s1 + $0x8] sm:$0xff]  ;;  %v34_v15 = vld [vmem:[%s354_s1] sm:$0xff] }
   0xd   :  { %v33_v16 = vld [vmem:[%s353_s0] sm:$0xff]  ;;  %v76_v17 = vld [vmem:[%s356_s3 + $0x8] sm:$0xff] }
   0xe   :  { %60 = vmatpush.msra.mxu0 %v43_v6  ;;  %99 = vmatpush.msra.mxu1 %v76_v17  ;;  %v75_v18 = vld [vmem:[%s356_s3] sm:$0xff]  ;;  %v137_v28 = vld [vmem:[%s360_s7 + $0x8] sm:$0xff] }
   0xf   :  { %v187_v19 = vld [vmem:[%s355_s2] ss:$0 sm:$0xff]  ;;  %159 = vmatpush.msra.mxu3 %v137_v28 }
  0x10   :  { %61 = vmatpush.msra.mxu0 %v42_v7  ;;  %100 = vmatpush.msra.mxu1 %v75_v18  ;;  %v106_v23 = vld [vmem:[%s358_s5] sm:$0xff] }
  0x11   :  { %130 = vmatpush.msra.mxu2 %v106_v23  ;;  %v188_v24 = vld [vmem:[%s357_s4] ss:$0 sm:$0xff] }
  0x12   :  { %62 = vmatpush.msra.mxu0 %v41_v8  ;;  %v136_v29 = vld [vmem:[%s360_s7] sm:$0xff] }
  0x13   :  { %160 = vmatpush.msra.mxu3 %v136_v29  ;;  %v189_v30 = vld [vmem:[%s359_s6] ss:$0 sm:$0xff] }
  0x14   :  { %63 = vmatpush.msra.mxu0 %v40_v9  ;;  %v190_v34 = vld [vmem:[%s361_s8] ss:$0 sm:$0xff] }
  0x16   :  { %64 = vmatpush.msra.mxu0 %v39_v10 }
  0x18   :  { %65 = vmatpush.msra.mxu0 %v38_v11 }
  0x1a   :  { %66 = vmatpush.msra.mxu0 %v37_v12 }
  0x1c   :  { %67 = vmatpush.msra.mxu0 %v36_v13 }
  0x1e   :  { %68 = vmatpush.msra.mxu0 %v35_v14 }
  0x20   :  { %69 = vmatpush.msra.mxu0 %v34_v15 }
  0x21   :  { %70 = vmatmul.f32.vlgmr.msra.gmra.mxu0 %v33_v16 }
  0x9e   :  { %v71_v20 = vpop.f32.mrf.mxu0 }
  0x9f   :  { %v72_v21 = vadd.f32 %v187_v19, %v71_v20 }
  0xa1   :  { %v74_v22 = vmax.f32 %v72_v21, 0.0 }
  0xa3   :  { %183 = vmatmul.msk.f32.vlgmr.msra.gmra.mxu1 %vm81_vm0, %v74_v22 }
 0x120   :  { %v102_v25 = vpop.f32.mrf.mxu1 }
 0x121   :  { %v103_v26 = vadd.f32 %v188_v24, %v102_v25 }
 0x123   :  { %v105_v27 = vmax.f32 %v103_v26, 0.0 }
 0x125   :  { %184 = vmatmul.msk.f32.vlgmr.msra.gmra.mxu2 %vm111_vm1, %v105_v27 }
 0x1a8   :  { %v132_v31 = vpop.f32.mrf.mxu2 }
 0x1a9   :  { %v133_v32 = vadd.f32 %v189_v30, %v132_v31 }
 0x1ab   :  { %v135_v33 = vmax.f32 %v133_v32, 0.0 }
 0x1ad   :  { %185 = vmatmul.msk.f32.vlgmr.msra.gmra.mxu3 %vm81_vm0, %v135_v33 }
 0x230   :  { %v162_v35 = vpop.f32.mrf.mxu3 }
 0x231   :  { %v163_v36 = vadd.f32 %v190_v34, %v162_v35 }
 0x233   :  { %191 = vtanh.f32 %v163_v36 }
 0x239   :  { %v192_v37 = vpop.eup %191 }
 0x23a   :  { %166 = vst [vmem:[#allocation2] sm:$0xff] %v192_v37 }
 0x23b   :  { %177 = dma.vmem_to_hbm [thread:$0]  %s173_s14, 128, %s175_s16, [#allocation3]  }
 0x23c   :  { %217 = dma.done.wait [#allocation3], 128  }
 0x23d   :  { %218 = vsyncadd [#allocation3], 4294967168 }
 0x23e   :  { %182 = vsyncpa [#allocation3], 1 }

</bundles_post_ra>
